<compile_context>
chip_gen: v7x
topology: tpu7x:2x2x1
jax: 0.10.0
libtpu: 0.0.40
codegen_flags: <defaults>
</compile_context>

<pallas_src>
import numpy as np
import jax
import jax.numpy as jnp
from jax import lax
from jax.experimental import pallas as pl
from jax.experimental.pallas import tpu as pltpu

BN_EPS = 1e-5


def _vmem_limit_bytes():
    """~3/4 of per-core VMEM, capped at 100 MiB (96 MiB on v5e/v6e, 48 MiB on v7x)."""
    try:
        cap = int(pltpu.get_tpu_info().vmem_capacity_bytes)
        return int(min(cap * 3 // 4, 100 * 1024 * 1024))
    except Exception:
        return 48 * 1024 * 1024


def _parallel_params(vmem_limit):
    return pltpu.CompilerParams(dimension_semantics=("parallel",),
                                vmem_limit_bytes=int(vmem_limit))


# ----------------------------- Pallas kernels -----------------------------

def bn_stats_partial_kernel(x_ref, psum_ref, psq_ref):
    """Per-tile partial sum / sum-of-squares of x (finalized to scale/shift in XLA)."""
    x = x_ref[...]
    psum_ref[0] = jnp.sum(x, axis=0, keepdims=True)
    psq_ref[0] = jnp.sum(x * x, axis=0, keepdims=True)


def bn_relu_conv1x1_pstats_kernel(x_ref, scale_ref, shift_ref, w_ref,
                                  out_ref, psum_ref, psq_ref):
    """Fused BN(affine) -> ReLU -> 1x1 conv.  Output stored in bf16; per-tile
    partial stats of the (f32) output are emitted for the next BatchNorm."""
    xn = jnp.maximum(x_ref[...] * scale_ref[...] + shift_ref[...], 0.0)   # f32 VPU
    y = jnp.dot(xn.astype(jnp.bfloat16), w_ref[...],                      # bf16 MXU
                preferred_element_type=jnp.float32)
    out_ref[...] = y.astype(out_ref.dtype)                                # bf16 store
    psum_ref[0] = jnp.sum(y, axis=0, keepdims=True)
    psq_ref[0] = jnp.sum(y * y, axis=0, keepdims=True)


def conv3x3_pstats_kernel(x_ref, scale_ref, shift_ref, w_ref,
                          out_ref, psum_ref, psq_ref):
    """Fused BN2 -> ReLU -> 3x3 conv (pad=1, stride=1) on one NHWC image.

    The 1-pixel halo is handled in-kernel (no HBM pad pass).  The kw taps are
    folded into the contraction dimension so the conv is 3 matmuls with
    K = 3*Cin; the three matmuls accumulate in a value (no scratch round trip).
    Output is stored in bf16; per-image partial stats (from the f32 result)
    are emitted for BN3.
    """
    H, W, Cout = out_ref.shape[1], out_ref.shape[2], out_ref.shape[3]
    Cin = x_ref.shape[3]

    # BN + ReLU in f32 on the VPU, then cast once to bf16 for the MXU.
    xn = jnp.maximum(x_ref[0].astype(jnp.float32) * scale_ref[...]
                     + shift_ref[...], 0.0)                               # (H,W,Cin)
    xb = xn.astype(jnp.bfloat16)

    # stackp[h', w, kw*Cin:(kw+1)*Cin] == xpad[h', w+kw, :] where xpad has a
    # 1-pixel zero border (bf16 temporaries only).
    # TODO(synk): for large Cin, replace the lane-axis concat with a pre-zeroed
    # persistent VMEM scratch written interior-only (and add H-tiling w/ halo).
    zcol = jnp.zeros((H, 1, Cin), jnp.bfloat16)
    left = jnp.concatenate([zcol, xb[:, :W - 1, :]], axis=1)              # kw = 0
    right = jnp.concatenate([xb[:, 1:, :], zcol], axis=1)                 # kw = 2
    stack = jnp.concatenate([left, xb, right], axis=2)                    # (H, W, 3Cin)
    zrow = jnp.zeros((1, W, 3 * Cin), jnp.bfloat16)
    stackp = jnp.concatenate([zrow, stack, zrow], axis=0)                 # (H+2, W, 3Cin)

    y = jnp.dot(stackp[0:H].reshape(H * W, 3 * Cin), w_ref[0],
                preferred_element_type=jnp.float32)
    y = y + jnp.dot(stackp[1:H + 1].reshape(H * W, 3 * Cin), w_ref[1],
                    preferred_element_type=jnp.float32)
    y = y + jnp.dot(stackp[2:H + 2].reshape(H * W, 3 * Cin), w_ref[2],
                    preferred_element_type=jnp.float32)                   # (H*W, Cout)

    out_ref[0] = y.astype(out_ref.dtype).reshape(H, W, Cout)              # bf16 store
    psum_ref[0] = jnp.sum(y, axis=0, keepdims=True)
    psq_ref[0] = jnp.sum(y * y, axis=0, keepdims=True)


def bn_relu_conv1x1_add_kernel(x_ref, scale_ref, shift_ref, w_ref, res_ref, o_ref):
    """Fused BN -> ReLU -> 1x1 conv -> residual add (bf16 activation input)."""
    xn = jnp.maximum(x_ref[...].astype(jnp.float32) * scale_ref[...]
                     + shift_ref[...], 0.0)
    o_ref[...] = (jnp.dot(xn.astype(jnp.bfloat16), w_ref[...],
                          preferred_element_type=jnp.float32)
                  + res_ref[...])


# ----------------------------- wrappers -----------------------------------

def _pick_tile_m(m, target):
    """Largest multiple-of-8 divisor of m that is <= target (or m itself)."""
    # TODO(synk): add remainder-tile handling so awkward M cannot fall back to
    # a single full-array block.
    target = max(8, (int(target) // 8) * 8)
    if m <= target:
        return m
    for tm in range(target, 7, -8):
        if m % tm == 0:
            return tm
    return m


def _scale_shift_from_partials(psum, psq, gamma, beta, total_rows):
    """Tiny XLA finalize: partial sums -> (scale, shift) for BN (biased var)."""
    inv_m = 1.0 / float(total_rows)
    mean = jnp.sum(psum, axis=(0, 1)) * inv_m
    ex2 = jnp.sum(psq, axis=(0, 1)) * inv_m
    var = jnp.maximum(ex2 - mean * mean, 0.0)          # clamp f32 cancellation
    scale = gamma * lax.rsqrt(var + BN_EPS)
    shift = beta - mean * scale
    c = gamma.shape[0]
    return scale.reshape(1, c), shift.reshape(1, c)


def bn_stats_partials(x2d, tile_m, vmem_limit):
    M, C = x2d.shape
    tm = _pick_tile_m(M, tile_m)
    T = M // tm
    return pl.pallas_call(
        bn_stats_partial_kernel,
        grid=(T,),
        in_specs=(pl.BlockSpec((tm, C), lambda i: (i, 0)),),
        out_specs=(
            pl.BlockSpec((1, 1, C), lambda i: (i, 0, 0)),
            pl.BlockSpec((1, 1, C), lambda i: (i, 0, 0)),
        ),
        out_shape=(jax.ShapeDtypeStruct((T, 1, C), jnp.float32),
                   jax.ShapeDtypeStruct((T, 1, C), jnp.float32)),
        compiler_params=_parallel_params(vmem_limit),
    )(x2d)


def bn_relu_conv1x1_pstats(x2d, scale, shift, w_bf16, tile_m, vmem_limit):
    M, Cin = x2d.shape
    Cout = w_bf16.shape[1]
    tm = _pick_tile_m(M, tile_m)
    T = M // tm
    # TODO(synk): add a K-tiling grid axis for very large Cin (>=1024) so the
    # per-step VMEM block is bounded independently of Cin on v7x.
    return pl.pallas_call(
        bn_relu_conv1x1_pstats_kernel,
        grid=(T,),
        in_specs=(
            pl.BlockSpec((tm, Cin), lambda i: (i, 0)),
            pl.BlockSpec((1, Cin), lambda i: (0, 0)),
            pl.BlockSpec((1, Cin), lambda i: (0, 0)),
            pl.BlockSpec((Cin, Cout), lambda i: (0, 0)),
        ),
        out_specs=(
            pl.BlockSpec((tm, Cout), lambda i: (i, 0)),
            pl.BlockSpec((1, 1, Cout), lambda i: (i, 0, 0)),
            pl.BlockSpec((1, 1, Cout), lambda i: (i, 0, 0)),
        ),
        out_shape=(jax.ShapeDtypeStruct((M, Cout), jnp.bfloat16),
                   jax.ShapeDtypeStruct((T, 1, Cout), jnp.float32),
                   jax.ShapeDtypeStruct((T, 1, Cout), jnp.float32)),
        compiler_params=_parallel_params(vmem_limit),
    )(x2d, scale, shift, w_bf16)


def conv3x3_pstats(x_nhwc, scale, shift, w_taps_bf16, vmem_limit):
    N, H, W, Cin = x_nhwc.shape
    Cout = w_taps_bf16.shape[2]
    # TODO(synk): Cout < 128 leaves the output lane dim sparse (masked stores);
    # padding channels to 128 (and the weights to match) would make the stores
    # lane-dense on narrow stages.
    return pl.pallas_call(
        conv3x3_pstats_kernel,
        grid=(N,),
        in_specs=(
            pl.BlockSpec((1, H, W, Cin), lambda n: (n, 0, 0, 0)),
            pl.BlockSpec((1, Cin), lambda n: (0, 0)),
            pl.BlockSpec((1, Cin), lambda n: (0, 0)),
            pl.BlockSpec((3, 3 * Cin, Cout), lambda n: (0, 0, 0)),
        ),
        out_specs=(
            pl.BlockSpec((1, H, W, Cout), lambda n: (n, 0, 0, 0)),
            pl.BlockSpec((1, 1, Cout), lambda n: (n, 0, 0)),
            pl.BlockSpec((1, 1, Cout), lambda n: (n, 0, 0)),
        ),
        out_shape=(jax.ShapeDtypeStruct((N, H, W, Cout), jnp.bfloat16),
                   jax.ShapeDtypeStruct((N, 1, Cout), jnp.float32),
                   jax.ShapeDtypeStruct((N, 1, Cout), jnp.float32)),
        compiler_params=_parallel_params(vmem_limit),
    )(x_nhwc, scale, shift, w_taps_bf16)


def bn_relu_conv1x1_add(x2d_bf16, scale, shift, w_bf16, residual, tile_m, vmem_limit):
    M, Cin = x2d_bf16.shape
    Cout = w_bf16.shape[1]
    tm = _pick_tile_m(M, tile_m)
    return pl.pallas_call(
        bn_relu_conv1x1_add_kernel,
        grid=(M // tm,),
        in_specs=(
            pl.BlockSpec((tm, Cin), lambda i: (i, 0)),
            pl.BlockSpec((1, Cin), lambda i: (0, 0)),
            pl.BlockSpec((1, Cin), lambda i: (0, 0)),
            pl.BlockSpec((Cin, Cout), lambda i: (0, 0)),
            pl.BlockSpec((tm, Cout), lambda i: (i, 0)),
        ),
        out_specs=pl.BlockSpec((tm, Cout), lambda i: (i, 0)),
        out_shape=jax.ShapeDtypeStruct((M, Cout), jnp.float32),
        compiler_params=_parallel_params(vmem_limit),
    )(x2d_bf16, scale, shift, w_bf16, residual)


# ----------------------------- module --------------------------------------

class BottleneckPallas:
    """Pre-activation Bottleneck (bn-relu-conv x3 + residual) with Bayesian convs."""
    expansion = 4

    def __init__(self, key, inplanes, planes, stride=1, lv_init=-5.0, var_p=-1.0,
                 tile_m=1024):
        assert stride == 1
        # TODO(synk): stride>1 / external `downsample` path not implemented
        # (module defaults stride=1, downsample=None are used here).
        del var_p  # prior variance only affects the KL term, not the forward pass
        self.inplanes = inplanes
        self.planes = planes
        self.outplanes = planes * self.expansion
        # TODO(synk): sweep tile_m up to 2048 on v5e/v6e (128 MiB VMEM).
        self.tile_m = tile_m
        self.vmem_limit = _vmem_limit_bytes()
        ks = jax.random.split(key, 9)

        def bayes_weight(kmu, keps, kh, kw, cin, cout):
            n = kh * kw * cout
            mu = jax.random.normal(kmu, (kh, kw, cin, cout), jnp.float32) * np.sqrt(2.0 / n)
            eps = jax.random.normal(keps, (kh, kw, cin, cout), jnp.float32)
            return mu + np.float32(np.exp(0.5 * lv_init)) * eps   # HWIO, reparameterized

        self.w1 = bayes_weight(ks[0], ks[1], 1, 1, inplanes, planes)
        self.w2 = bayes_weight(ks[2], ks[3], 3, 3, planes, planes)
        self.w3 = bayes_weight(ks[4], ks[5], 1, 1, planes, self.outplanes)

        def bn_params(k, c):
            kg, kb = jax.random.split(k)
            gamma = 1.0 + 0.1 * jax.random.normal(kg, (c,), jnp.float32)
            beta = 0.1 * jax.random.normal(kb, (c,), jnp.float32)
            return gamma, beta

        self.g1, self.b1 = bn_params(ks[6], inplanes)
        self.g2, self.b2 = bn_params(ks[7], planes)
        self.g3, self.b3 = bn_params(ks[8], planes)

        # kernel-friendly bf16 weight layouts (MXU operands; f32 accumulation)
        self.w1_bf16 = self.w1[0, 0].astype(jnp.bfloat16)                          # (Cin, planes)
        self.w2_bf16 = self.w2.reshape(3, 3 * planes, planes).astype(jnp.bfloat16)  # (kh, kw*Cin, Cout)
        self.w3_bf16 = self.w3[0, 0].astype(jnp.bfloat16)                          # (planes, outplanes)

    def forward(self, x_nchw):
        N, C, H, W = x_nchw.shape
        M = N * H * W
        # TODO(synk): keep the surrounding model NHWC (or fold the layout change
        # into the first/last kernel) to avoid these two full HBM round trips.
        x = jnp.transpose(x_nchw, (0, 2, 3, 1)).astype(jnp.float32)   # NHWC
        x2d = x.reshape(M, C)

        # bn1 statistics: per-tile partials (parallel grid) + tiny XLA finalize.
        # TODO(synk): in a full network, fuse these partials into the previous
        # block's residual-add epilogue so x is not re-read solely for stats.
        ps1, pq1 = bn_stats_partials(x2d, self.tile_m, self.vmem_limit)
        s1, sh1 = _scale_shift_from_partials(ps1, pq1, self.g1, self.b1, M)

        # bn1 -> relu -> conv1 (1x1); bf16 out1 + bn2 partial stats fused.
        out1, ps2, pq2 = bn_relu_conv1x1_pstats(
            x2d, s1, sh1, self.w1_bf16, self.tile_m, self.vmem_limit)
        s2, sh2 = _scale_shift_from_partials(ps2, pq2, self.g2, self.b2, M)

        # bn2 -> relu -> conv2 (3x3, pad=1); bf16 out2 + bn3 partial stats fused.
        out1_n = out1.reshape(N, H, W, self.planes)
        out2, ps3, pq3 = conv3x3_pstats(out1_n, s2, sh2, self.w2_bf16, self.vmem_limit)
        s3, sh3 = _scale_shift_from_partials(ps3, pq3, self.g3, self.b3, M)

        # bn3 -> relu -> conv3 (1x1) + residual (f32 residual, exact add).
        out2_2d = out2.reshape(M, self.planes)
        out3 = bn_relu_conv1x1_add(out2_2d, s3, sh3, self.w3_bf16, x2d,
                                   self.tile_m, self.vmem_limit)

        out = out3.reshape(N, H, W, self.outplanes)
        return jnp.transpose(out, (0, 3, 1, 2))                       # back to NCHW

    # pure-JAX reference.  policy="kernel" mirrors the kernels' precision policy
    # (bf16 matmul operands + bf16-stored intermediates, stats taken pre-cast);
    # policy="f32" is the original full-f32 module semantics.
    def reference(self, x_nchw, policy="kernel"):
        assert policy in ("kernel", "f32")
        use_bf16 = policy == "kernel"
        x = jnp.transpose(x_nchw, (0, 2, 3, 1)).astype(jnp.float32)
        dn = ('NHWC', 'HWIO', 'NHWC')

        def conv(h, w, pad):
            if use_bf16:
                h = h.astype(jnp.bfloat16)
                w = w.astype(jnp.bfloat16)
            return lax.conv_general_dilated(h, w, (1, 1), pad, dimension_numbers=dn,
                                            preferred_element_type=jnp.float32)

        def bn_relu(h_stats, h_apply, gamma, beta):
            mean = h_stats.mean(axis=(0, 1, 2))
            var = h_stats.var(axis=(0, 1, 2))          # biased, like torch BN (train)
            return jnp.maximum((h_apply - mean) * gamma / jnp.sqrt(var + BN_EPS) + beta, 0.0)

        def quant(h):
            return h.astype(jnp.bfloat16).astype(jnp.float32) if use_bf16 else h

        h = conv(bn_relu(x, x, self.g1, self.b1), self.w1, 'VALID')
        h = conv(bn_relu(h, quant(h), self.g2, self.b2), self.w2, ((1, 1), (1, 1)))
        h = conv(bn_relu(h, quant(h), self.g3, self.b3), self.w3, 'VALID')
        out = h + x
        return jnp.transpose(out, (0, 3, 1, 2))


if __name__ == "__main__":
    key = jax.random.PRNGKey(0)
    kx, kp = jax.random.split(key)
    # inplanes == planes*4 -> identity residual; tile_m=128 so the M=512 rows
    # exercise a 4-step parallel grid and the partial-stats reduction path.
    N, inplanes, planes, H, W = 2, 16, 4, 16, 16
    x = jax.random.normal(kx, (N, inplanes, H, W), jnp.float32)

    block = BottleneckPallas(kp, inplanes, planes, tile_m=128)
    out = jax.block_until_ready(block.forward(x))
    assert out.shape == (N, planes * block.expansion, H, W)

    # Tight check against a reference with the same precision policy
    # (bf16 MXU operands + bf16-stored intermediates, f32 accumulation/stats).
    ref_kernel = block.reference(x, policy="kernel")
    np.testing.assert_allclose(np.asarray(out), np.asarray(ref_kernel),
                               atol=2e-2, rtol=2e-2)
    # Loose sanity check against the original full-f32 module semantics.
    ref_f32 = block.reference(x, policy="f32")
    np.testing.assert_allclose(np.asarray(out), np.asarray(ref_f32),
                               atol=1e-1, rtol=1e-1)
    print("KERNEL_OK")
</pallas_src>

<mosaic_0001>
module attributes {stable_mosaic.version = 11 : i64} {
  func.func @bn_stats_partial_kernel(%arg0: i32, %arg1: memref<128x16xf32, #tpu.memory_space<vmem>>, %arg2: memref<1x1x16xf32, #tpu.memory_space<vmem>>, %arg3: memref<1x1x16xf32, #tpu.memory_space<vmem>>) attributes {dimension_semantics = [#tpu.dimension_semantics<parallel>], iteration_bounds = array<i64: 4>, scalar_prefetch = 0 : i64, scratch_operands = 0 : i64, tpu.core_type = #tpu.core_type<tc>, window_params = [{transform_indices = @transform_0, window_bounds = array<i64: 128, 16>}, {transform_indices = @transform_1, window_bounds = array<i64: 1, 1, 16>}, {transform_indices = @transform_2, window_bounds = array<i64: 1, 1, 16>}]} {
    %c0 = arith.constant 0 : index
    %c0_0 = arith.constant 0 : index
    %0 = vector.load %arg1[%c0, %c0_0] : memref<128x16xf32, #tpu.memory_space<vmem>>, vector<128x16xf32>
    %cst = arith.constant dense<0.000000e+00> : vector<16xf32>
    %1 = vector.multi_reduction <add>, %0, %cst [0] : vector<128x16xf32> to vector<16xf32>
    %2 = vector.shape_cast %1 : vector<16xf32> to vector<1x16xf32>
    %c0_1 = arith.constant 0 : index
    %c0_2 = arith.constant 0 : index
    %c0_3 = arith.constant 0 : index
    %3 = vector.load %arg2[%c0_1, %c0_2, %c0_3] : memref<1x1x16xf32, #tpu.memory_space<vmem>>, vector<1x1x16xf32>
    %4 = vector.shape_cast %3 : vector<1x1x16xf32> to vector<1x16xf32>
    %5 = vector.shape_cast %2 : vector<1x16xf32> to vector<1x1x16xf32>
    tpu.vector_store %arg2[%c0_1, %c0_2, %c0_3], %5 {strides = array<i32>} : memref<1x1x16xf32, #tpu.memory_space<vmem>>, vector<1x1x16xf32>,
    %6 = arith.mulf %0, %0 : vector<128x16xf32>
    %cst_4 = arith.constant dense<0.000000e+00> : vector<16xf32>
    %7 = vector.multi_reduction <add>, %6, %cst_4 [0] : vector<128x16xf32> to vector<16xf32>
    %8 = vector.shape_cast %7 : vector<16xf32> to vector<1x16xf32>
    %c0_5 = arith.constant 0 : index
    %c0_6 = arith.constant 0 : index
    %c0_7 = arith.constant 0 : index
    %9 = vector.load %arg3[%c0_5, %c0_6, %c0_7] : memref<1x1x16xf32, #tpu.memory_space<vmem>>, vector<1x1x16xf32>
    %10 = vector.shape_cast %9 : vector<1x1x16xf32> to vector<1x16xf32>
    %11 = vector.shape_cast %8 : vector<1x16xf32> to vector<1x1x16xf32>
    tpu.vector_store %arg3[%c0_5, %c0_6, %c0_7], %11 {strides = array<i32>} : memref<1x1x16xf32, #tpu.memory_space<vmem>>, vector<1x1x16xf32>,
    return
  }
  func.func @transform_0(%arg0: i32) -> (i32, i32) {
    %c0_i32 = arith.constant 0 : i32
    %c0_i32_0 = arith.constant 0 : i32
    return %arg0, %c0_i32 : i32, i32
  }
  func.func @transform_1(%arg0: i32) -> (i32, i32, i32) {
    %c0_i32 = arith.constant 0 : i32
    %c0_i32_0 = arith.constant 0 : i32
    %c0_i32_1 = arith.constant 0 : i32
    return %arg0, %c0_i32, %c0_i32_0 : i32, i32, i32
  }
  func.func @transform_2(%arg0: i32) -> (i32, i32, i32) {
    %c0_i32 = arith.constant 0 : i32
    %c0_i32_0 = arith.constant 0 : i32
    %c0_i32_1 = arith.constant 0 : i32
    return %arg0, %c0_i32, %c0_i32_0 : i32, i32, i32
  }
}

</mosaic_0001>

<bundles_post_ra>
// kernel: tpu_custom_call.1
= control target key start
LH: loop header
LB: loop body
LE: loop exit
PB: predicated region body
PF: predicated region fallthrough
CT: control target
= control target key end

     0   :  { %8 = vsyncpa [#allocation3], 0  ;;  %s729_s0 = inlined_call_operand.vmem [shape: f32[512,16], index: 0, kind: input, shape index: {}]   ;;  %s730_s1 = inlined_call_operand.hbm [shape: f32[4,1,16], index: 1, kind: output, shape index: {0}]   ;;  %s731_s2 = inlined_call_operand.hbm [shape: f32[4,1,16], index: 2, kind: output, shape index: {1}]  }
   0x1   :  { %10 = vsyncpa [#allocation3 + $0x1], 0 }
   0x2   :  { %11 = vsyncpa [#allocation5], 0 }
   0x3   :  { %13 = vsyncpa [#allocation5 + $0x1], 0  ;;  %s543_s9 = smov 0   ;;  %s545_s10 = smov 0  }
   0x4   :  { %s547_s11 = smov 0   ;;  %s549_s12 = smov 0  }
   0x5 LB: > { %s375_s13 = sadd.s32 4294967295, %s524_s12   ;;  %s376_s14 = sadd.s32 4294967294, %s524_s12   ;;  %s524_s12 = sphi %s549_s12, %s737_s12   ;;  %s520_s11 = sphi %s547_s11, %s736_s11   ;;  %s516_s10 = sphi %s545_s10, %s735_s10   ;;  %s512_s9 = sphi %s543_s9, %s734_s9  }
   0x6   : > { %s566_s15 = sadd.s32 1, %s524_s12   ;;  %s52_s16 = sadd.s32 1, %s520_s11 }
   0x7   : > { %s49_s17 = ssub.s32 %s524_s12, %s566_s15  ;;  %p62_p0 = scmp.ne.s32.totalorder %s520_s11, %s516_s10 }
   0x8   : > { %p50_p1 = scmp.eq.s32.totalorder %s49_s17, 0  ;;  %p63_p2 = scmp.eq.s32.totalorder %s375_s13, 3 }
   0x9   : > { %p68_p3 = scmp.ne.s32.totalorder %s516_s10, %s512_s9  ;;  %p69_p4 = scmp.eq.s32.totalorder %s376_s14, 3 }
   0xa   : > { %s576_s18 = scalar_select %p50_p1, %s520_s11, %s52_s16  }
   0xb   : > { %p578_p5 = por %p63_p2, %p62_p0  ;;  %p582_p6 = por %p69_p4, %p68_p3 }
   0xc   : > { %p379_p7 = scmp.ge.s32.totalorder %s524_s12, 1  ;;  %p122_p8 = scmp.lt.s32.totalorder %s524_s12, 5 }
   0xe   : > { %p123_p9 = pnand %p379_p7, %p122_p8 }
   0xf   : > { %s588_s21 = sshll.u32 (!%p123_p9), %s375_s13, 4  ;;  %vm169_vm0 = vcmask (!%p123_p9), 130048   ;;  %s643_s27 = sand.u32 (!%p123_p9), 1, %s516_s10   ;;  %vm207_vm1 = vcmask (!%p123_p9), 122880  }
  0x10   : > { %126 = sbr.rel (%p123_p9) target bundleno = 109 (0x6d), region = 24  ;;  %p148_p10 = scmp.lt.s32.totalorder (!%p123_p9), %s588_s21, 63 }
  0x11   : > { %s140_s28 = scalar_lea.vmem (!%p123_p9), [#allocation2], %s643_s27  ;;  %s655_s4 = scalar_lea.hbm (!%p123_p9), %s730_s1, %s588_s21 }
  0x12   : > { %s280_s29 = sshll.u32 (!%p123_p9), %s140_s28, 4  ;;  %s264_s5 = scalar_lea.sflag (!%p123_p9), [#allocation3], %s643_s27  ;;  %s649_s29 = int_to_ptr.vmem [resolvable:$true] %s280_s29 }
  0x13   : > { %s430_s6 = scalar_lea.vmem (!%p123_p9), %s649_s29, 16  ;;  %s526_s7 = smov (!%p123_p9), [#allocation2]  }
  0x14   : > { %p431_p11 = scmp.ne.s32.totalorder (!%p123_p9), %s649_s29, %s430_s6  ;;  %s434_s8 = sshll.u32 (!%p123_p9), %s526_s7, 4  ;;  %s435_s8 = int_to_ptr.vmem [resolvable:$false] %s434_s8 }
  0x15   : > { %s436_s13 = scalar_lea.vmem (!%p123_p9), %s435_s8, 32  ;;  %p437_p0 = scmp.lt.s32.totalorder (!%p123_p9), %s649_s29, %s435_s8 }
  0x16   : > { %p432_p12 = pnand (!%p123_p9), %p431_p11, %p578_p5  ;;  %p438_p1 = scmp.lt.s32.totalorder (!%p123_p9), %s436_s13, %s430_s6 }
  0x17   : > { %s149_s22 = scalar_select %p148_p10, %s588_s21, 63 }
  0x18   : > { %p433_p13 = pneg %p432_p12  ;;  %p439_p2 = por %p438_p1, %p437_p0 }
  0x19   : > { %s381_s23 = sshll.u32 %s149_s22, 3 }
  0x1a   : > { %s595_s26 = scalar_lea.vmem %s729_s0, %s381_s23  ;;  %p440_p3 = pnand %p439_p2, %p433_p13 }
  0x1b   : > { %v153_v0 = vld [vmem:[%s595_s26] sm:$0xff]  ;;  %v154_v1 = vld [vmem:[%s595_s26 + $0x8] sm:$0xff]  ;;  %v155_v2 = vld [vmem:[%s595_s26 + $0x10] sm:$0xff] }
  0x1c   : > { %v170_v3 = vsel %vm169_vm0, %v153_v0, 0.0  ;;  %v171_v4 = vsel %vm169_vm0, %v154_v1, 0.0  ;;  %v173_v5 = vsel %vm169_vm0, %v155_v2, 0.0  ;;  %v156_v6 = vld [vmem:[%s595_s26 + $0x18] sm:$0xff]  ;;  %v157_v9 = vld [vmem:[%s595_s26 + $0x20] sm:$0xff]  ;;  %v158_v12 = vld [vmem:[%s595_s26 + $0x28] sm:$0xff]  ;;  %v209_v14 = vmul.f32 %v153_v0, %v153_v0 }
  0x1d   : > { %v172_v7 = vadd.f32 %v171_v4, %v170_v3  ;;  %v175_v8 = vsel %vm169_vm0, %v156_v6, 0.0  ;;  %v177_v11 = vsel %vm169_vm0, %v157_v9, 0.0  ;;  %v210_v15 = vmul.f32 %v154_v1, %v154_v1  ;;  %v159_v18 = vld [vmem:[%s595_s26 + $0x30] sm:$0xff]  ;;  %v160_v23 = vld [vmem:[%s595_s26 + $0x38] sm:$0xff]  ;;  %v161_v30 = vld [vmem:[%s595_s26 + $0x40] sm:$0xff] }
  0x1e   : > { %v211_v16 = vmul.f32 %v155_v2, %v155_v2  ;;  %v179_v17 = vsel %vm169_vm0, %v158_v12, 0.0  ;;  %v212_v20 = vmul.f32 %v156_v6, %v156_v6  ;;  %v181_v21 = vsel %vm169_vm0, %v159_v18, 0.0  ;;  %v162_v36 = vld [vmem:[%s595_s26 + $0x48] sm:$0xff]  ;;  %v163_v42 = vld [vmem:[%s595_s26 + $0x50] sm:$0xff]  ;;  %v164_v48 = vld [vmem:[%s595_s26 + $0x58] sm:$0xff] }
  0x1f   : > { %v174_v10 = vadd.f32 %v173_v5, %v172_v7  ;;  %v213_v22 = vmul.f32 %v157_v9, %v157_v9  ;;  %v225_v25 = vsel %vm169_vm0, %v209_v14, 0.0  ;;  %v226_v26 = vsel %vm169_vm0, %v210_v15, 0.0  ;;  %v165_v54 = vld [vmem:[%s595_s26 + $0x60] sm:$0xff]  ;;  %v166_v60 = vld [vmem:[%s595_s26 + $0x68] sm:$0xff]  ;;  %v167_v2 = vld [vmem:[%s595_s26 + $0x70] sm:$0xff] }
  0x20   : > { %v228_v27 = vsel %vm169_vm0, %v211_v16, 0.0  ;;  %v183_v28 = vsel %vm169_vm0, %v160_v23, 0.0  ;;  %v227_v29 = vadd.f32 %v226_v26, %v225_v25  ;;  %v214_v32 = vmul.f32 %v158_v12, %v158_v12 }
  0x21   : > { %v176_v13 = vadd.f32 %v175_v8, %v174_v10  ;;  %v230_v33 = vsel %vm169_vm0, %v212_v20, 0.0  ;;  %v185_v34 = vsel %vm169_vm0, %v161_v30, 0.0  ;;  %v215_v38 = vmul.f32 %v159_v18, %v159_v18  ;;  %v168_v8 = vld [vmem:[%s595_s26 + $0x78] sm:$0xff] }
  0x22   : > { %v229_v35 = vadd.f32 %v228_v27, %v227_v29  ;;  %v232_v39 = vsel %vm169_vm0, %v213_v22, 0.0  ;;  %v187_v40 = vsel %vm169_vm0, %v162_v36, 0.0  ;;  %v216_v44 = vmul.f32 %v160_v23, %v160_v23 }
  0x23   : > { %v178_v19 = vadd.f32 %v177_v11, %v176_v13  ;;  %v234_v45 = vsel %vm169_vm0, %v214_v32, 0.0  ;;  %v189_v46 = vsel %vm169_vm0, %v163_v42, 0.0  ;;  %v217_v50 = vmul.f32 %v161_v30, %v161_v30 }
  0x24   : > { %v231_v41 = vadd.f32 %v230_v33, %v229_v35  ;;  %v236_v51 = vsel %vm169_vm0, %v215_v38, 0.0  ;;  %v191_v52 = vsel %vm169_vm0, %v164_v48, 0.0  ;;  %v218_v56 = vmul.f32 %v162_v36, %v162_v36 }
  0x25   : > { %v180_v24 = vadd.f32 %v179_v17, %v178_v19  ;;  %v238_v57 = vsel %vm169_vm0, %v216_v44, 0.0  ;;  %v193_v58 = vsel %vm169_vm0, %v165_v54, 0.0  ;;  %v219_v62 = vmul.f32 %v163_v42, %v163_v42 }
  0x26   : > { %v233_v47 = vadd.f32 %v232_v39, %v231_v41  ;;  %v240_v63 = vsel %vm169_vm0, %v217_v50, 0.0  ;;  %v195_v0 = vsel %vm169_vm0, %v166_v60, 0.0  ;;  %v220_v4 = vmul.f32 %v164_v48, %v164_v48 }
  0x27   : > { %v182_v31 = vadd.f32 %v181_v21, %v180_v24  ;;  %v242_v5 = vsel %vm169_vm0, %v218_v56, 0.0  ;;  %v197_v6 = vsel %vm169_vm0, %v167_v2, 0.0  ;;  %v221_v10 = vmul.f32 %v165_v54, %v165_v54 }
  0x28   : > { %v235_v53 = vadd.f32 %v234_v45, %v233_v47  ;;  %v244_v11 = vsel %vm169_vm0, %v219_v62, 0.0  ;;  %v199_v12 = vsel %vm169_vm0, %v168_v8, 0.0  ;;  %v222_v15 = vmul.f32 %v166_v60, %v166_v60 }
  0x29   : > { %v184_v37 = vadd.f32 %v183_v28, %v182_v31  ;;  %v246_v16 = vsel %vm169_vm0, %v220_v4, 0.0  ;;  %v223_v19 = vmul.f32 %v167_v2, %v167_v2  ;;  %v248_v20 = vsel %vm169_vm0, %v221_v10, 0.0 }
  0x2a   : > { %v237_v59 = vadd.f32 %v236_v51, %v235_v53  ;;  %v224_v23 = vmul.f32 %v168_v8, %v168_v8  ;;  %v250_v24 = vsel %vm169_vm0, %v222_v15, 0.0 }
  0x2b   : > { %v186_v43 = vadd.f32 %v185_v34, %v184_v37  ;;  %v252_v27 = vsel %vm169_vm0, %v223_v19, 0.0 }
  0x2c   : > { %v239_v1 = vadd.f32 %v238_v57, %v237_v59  ;;  %v254_v30 = vsel %vm169_vm0, %v224_v23, 0.0 }
  0x2d   : > { %v188_v49 = vadd.f32 %v187_v40, %v186_v43 }
  0x2e   : > { %v241_v7 = vadd.f32 %v240_v63, %v239_v1 }
  0x2f   : > { %v190_v55 = vadd.f32 %v189_v46, %v188_v49 }
  0x30   : > { %v243_v13 = vadd.f32 %v242_v5, %v241_v7 }
  0x31   : > { %v192_v61 = vadd.f32 %v191_v52, %v190_v55 }
  0x32   : > { %v245_v17 = vadd.f32 %v244_v11, %v243_v13 }
  0x33   : > { %v194_v3 = vadd.f32 %v193_v58, %v192_v61 }
  0x34   : > { %v247_v21 = vadd.f32 %v246_v16, %v245_v17 }
  0x35   : > { %v196_v9 = vadd.f32 %v195_v0, %v194_v3 }
  0x36   : > { %v249_v25 = vadd.f32 %v248_v20, %v247_v21 }
  0x37   : > { %v198_v14 = vadd.f32 %v197_v6, %v196_v9 }
  0x38   : > { %v251_v28 = vadd.f32 %v250_v24, %v249_v25 }
  0x39   : > { %v200_v18 = vadd.f32 %v199_v12, %v198_v14 }
  0x3a   : > { %v253_v31 = vadd.f32 %v252_v27, %v251_v28 }
  0x3b   : > { %v201_v22 = vrot.slane %v200_v18, 4 }
  0x3c   : > { %v255_v33 = vadd.f32 %v254_v30, %v253_v31 }
  0x3d   : > { %v202_v26 = vadd.f32 %v201_v22, %v200_v18 }
  0x3e   : > { %v256_v35 = vrot.slane %v255_v33, 4 }
  0x3f   : > { %v203_v29 = vrot.slane %v202_v26, 2 }
  0x40   : > { %v257_v37 = vadd.f32 %v256_v35, %v255_v33 }
  0x41   : > { %v204_v32 = vadd.f32 %v203_v29, %v202_v26 }
  0x42   : > { %v258_v38 = vrot.slane %v257_v37, 2 }
  0x43   : > { %v205_v34 = vrot.slane %v204_v32, 1 }
  0x45   : > { %v206_v36 = vadd.f32 %v205_v34, %v204_v32 }
  0x47   : > { %208 = vst.msk [vmem:[%s140_s28] sm:$0x1] %vm207_vm1, %v206_v36 }
  0x48   : > { %443 = shalt.err (!%p440_p3)
}
  0x49   : > { %s444_s14 = scalar_lea.hbm %s655_s4, 16  ;;  %s448_s22 = scalar_lea.hbm %s730_s1, 64 }
  0x4a   : > { %p445_p4 = scmp.ne.s32.totalorder %s655_s4, %s444_s14  ;;  %p449_p9 = scmp.lt.u32.totalorder %s655_s4, %s730_s1 }
  0x4b   : > { %p450_p10 = scmp.lt.u32.totalorder %s448_s22, %s444_s14  ;;  %p452_p12 = scmp.lt.u32.totalorder %s444_s14, %s655_s4 }
  0x4c   : > { %p446_p7 = pnand %p445_p4, %p578_p5 }
  0x4d   : > { %p451_p11 = por %p450_p10, %p449_p9 }
  0x4e   : > { %p447_p8 = pneg %p446_p7 }
  0x4f   : > { %p453_p13 = por %p452_p12, %p451_p11 }
  0x51   : > { %p454_p0 = pnand %p453_p13, %p447_p8 }
  0x53   : > { %457 = shalt.err (!%p454_p0)
}
  0x54   : > { %386 = dma.vmem_to_hbm [thread:$0]  (%p578_p5), %s649_s29, 16, %s655_s4, %s264_s5   ;;  %v259_v39 = vadd.f32 %v258_v38, %v257_v37 }
  0x55   : > { %s146_s25 = scalar_lea.vmem [#allocation4], %s643_s27  ;;  %s687_s3 = scalar_lea.hbm %s731_s2, %s588_s21 }
  0x56   : > { %s293_s26 = sshll.u32 %s146_s25, 4  ;;  %v260_v40 = vrot.slane %v259_v39, 1  ;;  %s268_s6 = scalar_lea.sflag [#allocation5], %s643_s27  ;;  %s681_s26 = int_to_ptr.vmem [resolvable:$true] %s293_s26 }
  0x57   : > { %s458_s7 = scalar_lea.vmem %s681_s26, 16  ;;  %s527_s29 = smov [#allocation4]  }
  0x58   : > { %v261_v41 = vadd.f32 %v260_v40, %v259_v39  ;;  %p459_p1 = scmp.ne.s32.totalorder %s681_s26, %s458_s7  ;;  %s462_s4 = sshll.u32 %s527_s29, 4  ;;  %s463_s4 = int_to_ptr.vmem [resolvable:$false] %s462_s4 }
  0x59   : > { %s464_s5 = scalar_lea.vmem %s463_s4, 32  ;;  %p465_p4 = scmp.lt.s32.totalorder %s681_s26, %s463_s4 }
  0x5a   : > { %262 = vst.msk [vmem:[%s146_s25] sm:$0x1] %vm207_vm1, %v261_v41  ;;  %p460_p2 = pnand %p459_p1, %p578_p5  ;;  %p466_p7 = scmp.lt.s32.totalorder %s464_s5, %s458_s7 }
  0x5c   : > { %p461_p3 = pneg %p460_p2  ;;  %p467_p8 = por %p466_p7, %p465_p4 }
  0x5e   : > { %p468_p9 = pnand %p467_p8, %p461_p3 }
  0x60   : > { %471 = shalt.err (!%p468_p9)
}
  0x61   : > { %s472_s21 = scalar_lea.hbm %s687_s3, 16  ;;  %s476_s13 = scalar_lea.hbm %s731_s2, 64 }
  0x62   : > { %p473_p10 = scmp.ne.s32.totalorder %s687_s3, %s472_s21  ;;  %p477_p13 = scmp.lt.u32.totalorder %s687_s3, %s731_s2 }
  0x63   : > { %p478_p0 = scmp.lt.u32.totalorder %s476_s13, %s472_s21  ;;  %p480_p2 = scmp.lt.u32.totalorder %s472_s21, %s687_s3 }
  0x64   : > { %p474_p11 = pnand %p473_p10, %p578_p5 }
  0x65   : > { %p479_p1 = por %p478_p0, %p477_p13 }
  0x66   : > { %p475_p12 = pneg %p474_p11 }
  0x67   : > { %p481_p3 = por %p480_p2, %p479_p1 }
  0x69   : > { %p482_p4 = pnand %p481_p3, %p475_p12 }
  0x6b   : > { %485 = shalt.err (!%p482_p4)
}
  0x6c   : > { %387 = dma.vmem_to_hbm [thread:$0]  (%p578_p5), %s681_s26, 16, %s687_s3, %s268_s6  }
  0x6d PF: > { %p397_p7 = scmp.ge.s32.totalorder %s524_s12, 2  ;;  %s305_s17 = sand.u32 1, %s512_s9  }
  0x6e   : > { %s306_s22 = scalar_lea.sflag [#allocation3], %s305_s17 }
  0x6f   : > { %p391_p8 = pnand %p397_p7, %p582_p6 }
  0x71   : > { %503 = dma.done.wait (!%p391_p8), %s306_s22, 16  }
  0x72   : > { %505 = vsyncadd (!%p391_p8), %s306_s22, 4294967280  ;;  %s314_s23 = scalar_lea.sflag [#allocation5], %s305_s17 }
  0x73   : > { %507 = dma.done.wait (!%p391_p8), %s314_s23, 16  }
  0x74   : > { %509 = vsyncadd (!%p391_p8), %s314_s23, 4294967280  ;;  %p16_p5 = scmp.ge.s32.totalorder %s566_s15, 6   ;;  %s734_s9 = smov %s516_s10 }
  0x75   : > { %s735_s10 = smov %s520_s11  ;;  %s736_s11 = smov %s576_s18 }
  0x76   : > { %s737_s12 = smov %s566_s15  ;;  %18 = sbr.rel (!%p16_p5) target bundleno = 5 (0x5), region = 76 }
  0x7d   :  { %318 = vsyncpa [#allocation3], 1 }
  0x7e   :  { %320 = vsyncpa [#allocation3 + $0x1], 1 }
  0x7f   :  { %321 = vsyncpa [#allocation5], 1 }
  0x80   :  { %323 = vsyncpa [#allocation5 + $0x1], 1 }

</bundles_post_ra>
